<compile_context>
chip_gen: v7x
topology: tpu7x:2x2x1
jax: 0.10.0
libtpu: 0.0.40
codegen_flags: <defaults>
</compile_context>

<pallas_src>
import functools

import jax
import jax.numpy as jnp
from jax.experimental import pallas as pl
from jax.experimental.pallas import tpu as pltpu

EPS = 1e-5
_T_MAX = 128 * 1024            # lane elems / tile: padded (8, T) f32 slab = 4 MiB
_VMEM_LIMIT = 32 * 1024 * 1024  # sweep-3 double-buffers in+out (~16 MiB) + weights


def _plan(B, HW, tile_hw=None, batch_block=None):
    """Pick (Bblk, T, HW_pad): each grid step handles a (Bblk, C, T) slab."""
    if tile_hw is not None:
        T = tile_hw
        if T != HW:
            assert T % 128 == 0, "tile_hw must be a multiple of 128 or equal H*W"
        HW_pad = -(-HW // T) * T
        Bblk = 1 if batch_block is None else batch_block
        assert B % Bblk == 0, "batch_block must divide B"
        return Bblk, T, HW_pad

    if HW > _T_MAX:
        # Prefer a large tile that divides HW exactly (avoids a pad copy of x).
        for T in range(_T_MAX, _T_MAX // 4 - 1, -128):
            if HW % T == 0:
                return 1, T, HW
        # TODO(synk): handle the ragged last tile with pl.BoundedSlice instead of
        #             a wrapper-side zero-pad copy of x.
        T = _T_MAX
        return 1, T, -(-HW // T) * T

    # Small / medium images: one tile spans a whole image; group several batch
    # images per grid step so each step still moves a reasonable HBM slab.
    Bblk = 1
    if batch_block is not None:
        Bblk = batch_block
        assert B % Bblk == 0
    else:
        for cand in range(B, 0, -1):
            if B % cand == 0 and cand * HW <= _T_MAX:
                Bblk = cand
                break
    return Bblk, HW, HW


def _conv1x1(w, x):
    """Channel-major 1x1 conv: w (C_out, C_in), x (..., C_in, T) -> (..., C_out, T)."""
    c_in = x.shape[-2]
    if c_in > 32:
        # MXU path for wide channel counts.
        # TODO(synk): for C >= 128 tile channels to MXU-native 128/256 multiples.
        return jnp.einsum("oc,...ct->...ot", w, x,
                          preferred_element_type=jnp.float32)
    # VPU broadcast-FMA path: full lane width, no MXU latency for tiny C.
    acc = w[:, 0:1] * x[..., 0:1, :]
    for k in range(1, c_in):
        acc = acc + w[:, k:k + 1] * x[..., k:k + 1, :]
    return acc


def _pad_mask(shape, tile, valid_hw):
    """Mask (True = real pixel) for the zero-padded tail of the pixel axis."""
    col = jax.lax.broadcasted_iota(jnp.int32, shape, len(shape) - 1)
    return (col + pl.program_id(1) * tile) < valid_hw


def _stats1_kernel(x_ref, w1_ref, sum_ref, ssq_ref, *, tile, valid_hw):
    @pl.when(pl.program_id(1) == 0)
    def _():
        sum_ref[...] = jnp.zeros_like(sum_ref)
        ssq_ref[...] = jnp.zeros_like(ssq_ref)

    z1 = _conv1x1(w1_ref[...], x_ref[...])                    # (Bblk, C, T)
    if valid_hw is not None:
        z1 = jnp.where(_pad_mask(z1.shape, tile, valid_hw), z1, 0.0)
    # Lane reduce first (keeps channels on sublanes), then fold the batch block.
    # TODO(synk): Welford/Kahan accumulation if |mean| >> std at production M.
    sum_ref[...] += jnp.sum(jnp.sum(z1, axis=2, keepdims=True), axis=0)
    ssq_ref[...] += jnp.sum(jnp.sum(z1 * z1, axis=2, keepdims=True), axis=0)


def _stats2_kernel(x_ref, a1_ref, c1_ref, w2_ref, sum_ref, ssq_ref, *, tile, valid_hw):
    @pl.when(pl.program_id(1) == 0)
    def _():
        sum_ref[...] = jnp.zeros_like(sum_ref)
        ssq_ref[...] = jnp.zeros_like(ssq_ref)

    h = jnp.maximum(_conv1x1(a1_ref[...], x_ref[...]) + c1_ref[...], 0.0)
    z2 = _conv1x1(w2_ref[...], h)                             # un-normalized conv2 out
    if valid_hw is not None:
        # Padded pixels give h = relu(c1) != 0, so they MUST be masked here.
        z2 = jnp.where(_pad_mask(z2.shape, tile, valid_hw), z2, 0.0)
    sum_ref[...] += jnp.sum(jnp.sum(z2, axis=2, keepdims=True), axis=0)
    ssq_ref[...] += jnp.sum(jnp.sum(z2 * z2, axis=2, keepdims=True), axis=0)


def _apply_kernel(x_ref, yaw_ref, a1_ref, c1_ref, a2_ref, c2_ref, out_ref):
    x = x_ref[...]                                            # (Bblk, C, T)
    h = jnp.maximum(_conv1x1(a1_ref[...], x) + c1_ref[...], 0.0)
    y = _conv1x1(a2_ref[...], h) + c2_ref[...]                # bn2(conv2(h)) folded
    out_ref[...] = jnp.maximum(yaw_ref[...] * y + x, 0.0)     # yaw is (Bblk,1,1)


def basic_block_forward(x_nchw, yaw, w1, g1, b1, w2, g2, b2, *,
                        tile_hw=None, batch_block=None):
    """x_nchw: (B, C, H, W) f32, yaw: (B,) f32, w*: (C, C, 1, 1), g*/b*: (C,)."""
    B, C, H, W = x_nchw.shape
    HW = H * W
    M = B * HW                                               # real pixel count for BN
    Bblk, T, HW_pad = _plan(B, HW, tile_hw, batch_block)
    G = B // Bblk
    nT = HW_pad // T
    valid_hw = HW if HW_pad != HW else None

    x3d = x_nchw.reshape(B, C, HW).astype(jnp.float32)       # channel-major, no transpose
    if HW_pad != HW:
        x3d = jnp.pad(x3d, ((0, 0), (0, 0), (0, HW_pad - HW)))
    w1m = w1[:, :, 0, 0].astype(jnp.float32)                 # (C_out, C_in)
    w2m = w2[:, :, 0, 0].astype(jnp.float32)
    yaw3 = yaw.astype(jnp.float32).reshape(B, 1, 1)

    x_spec = pl.BlockSpec((Bblk, C, T), lambda g, t: (g, 0, t))
    mat_spec = pl.BlockSpec((C, C), lambda g, t: (0, 0))
    col_spec = pl.BlockSpec((C, 1), lambda g, t: (0, 0))
    acc_spec = pl.BlockSpec((None, C, 1), lambda g, t: (g, 0, 0))   # per-group partials
    yaw_spec = pl.BlockSpec((Bblk, 1, 1), lambda g, t: (g, 0, 0))
    part_shape = jax.ShapeDtypeStruct((G, C, 1), jnp.float32)

    stats_params = pltpu.CompilerParams(
        dimension_semantics=("parallel", "arbitrary"),       # groups shard across TCs
        vmem_limit_bytes=_VMEM_LIMIT)

    # ---- sweep 1: per-channel sum / sumsq of z1 = conv1(x) (per-group partials) ----
    sum1, ssq1 = pl.pallas_call(
        functools.partial(_stats1_kernel, tile=T, valid_hw=valid_hw),
        out_shape=(part_shape, part_shape),
        grid_spec=pltpu.PrefetchScalarGridSpec(
            num_scalar_prefetch=0, grid=(G, nT),
            in_specs=[x_spec, mat_spec],
            out_specs=(acc_spec, acc_spec)),
        compiler_params=stats_params,
    )(x3d, w1m)
    sum1 = jnp.sum(sum1, axis=0)                             # (C, 1)
    ssq1 = jnp.sum(ssq1, axis=0)

    mean1 = sum1 / M
    var1 = jnp.maximum(ssq1 / M - mean1 * mean1, 0.0)
    scale1 = g1.reshape(C, 1).astype(jnp.float32) * jax.lax.rsqrt(var1 + EPS)
    shift1 = b1.reshape(C, 1).astype(jnp.float32) - mean1 * scale1
    a1 = scale1 * w1m                                        # BN1 folded into conv1

    # ---- sweep 2: per-channel sum / sumsq of z2 = conv2(relu(bn1(z1))) ----
    sum2, ssq2 = pl.pallas_call(
        functools.partial(_stats2_kernel, tile=T, valid_hw=valid_hw),
        out_shape=(part_shape, part_shape),
        grid_spec=pltpu.PrefetchScalarGridSpec(
            num_scalar_prefetch=0, grid=(G, nT),
            in_specs=[x_spec, mat_spec, col_spec, mat_spec],
            out_specs=(acc_spec, acc_spec)),
        compiler_params=stats_params,
    )(x3d, a1, shift1, w2m)
    sum2 = jnp.sum(sum2, axis=0)
    ssq2 = jnp.sum(ssq2, axis=0)

    mean2 = sum2 / M
    var2 = jnp.maximum(ssq2 / M - mean2 * mean2, 0.0)
    scale2 = g2.reshape(C, 1).astype(jnp.float32) * jax.lax.rsqrt(var2 + EPS)
    shift2 = b2.reshape(C, 1).astype(jnp.float32) - mean2 * scale2
    a2 = scale2 * w2m                                        # BN2 folded into conv2

    # ---- sweep 3: apply everything (fully parallel over both grid axes) ----
    out3d = pl.pallas_call(
        _apply_kernel,
        out_shape=jax.ShapeDtypeStruct((B, C, HW_pad), jnp.float32),
        grid_spec=pltpu.PrefetchScalarGridSpec(
            num_scalar_prefetch=0, grid=(G, nT),
            in_specs=[x_spec, yaw_spec, mat_spec, col_spec, mat_spec, col_spec],
            out_specs=x_spec),
        compiler_params=pltpu.CompilerParams(
            dimension_semantics=("parallel", "parallel"),
            vmem_limit_bytes=_VMEM_LIMIT),
    )(x3d, yaw3, a1, shift1, a2, shift2)

    if HW_pad != HW:
        out3d = out3d[:, :, :HW]
    return out3d.reshape(B, C, H, W)


def basic_block_reference(x_nchw, yaw, w1, g1, b1, w2, g2, b2):
    """Plain-JAX reference (same math, high-precision matmuls)."""
    B, C, H, W = x_nchw.shape
    hp = jax.lax.Precision.HIGHEST
    x2d = jnp.transpose(x_nchw, (0, 2, 3, 1)).reshape(-1, C)
    z1 = jnp.matmul(x2d, w1[:, :, 0, 0].T, precision=hp)
    m1 = z1.mean(0); v1 = ((z1 - m1) ** 2).mean(0)
    h = jnp.maximum(g1 * (z1 - m1) / jnp.sqrt(v1 + EPS) + b1, 0.0)
    z2 = jnp.matmul(h, w2[:, :, 0, 0].T, precision=hp)
    m2 = z2.mean(0); v2 = ((z2 - m2) ** 2).mean(0)
    y = g2 * (z2 - m2) / jnp.sqrt(v2 + EPS) + b2
    yr = jnp.repeat(yaw, H * W).reshape(-1, 1)
    out = jnp.maximum(yr * y + x2d, 0.0)
    return jnp.transpose(out.reshape(B, H, W, C), (0, 3, 1, 2))


def _make_inputs(key, B, C, H, W):
    k_x, k_yaw, k_w1, k_w2, k_g1, k_b1, k_g2, k_b2 = jax.random.split(key, 8)
    scale = 1.0 / jnp.sqrt(jnp.float32(C))
    x = jax.random.normal(k_x, (B, C, H, W), jnp.float32)
    yaw = jax.random.normal(k_yaw, (B,), jnp.float32)
    w1 = jax.random.normal(k_w1, (C, C, 1, 1), jnp.float32) * scale
    w2 = jax.random.normal(k_w2, (C, C, 1, 1), jnp.float32) * scale
    g1 = 1.0 + 0.1 * jax.random.normal(k_g1, (C,), jnp.float32)
    b1 = 0.1 * jax.random.normal(k_b1, (C,), jnp.float32)
    g2 = 1.0 + 0.1 * jax.random.normal(k_g2, (C,), jnp.float32)
    b2 = 0.1 * jax.random.normal(k_b2, (C,), jnp.float32)
    return x, yaw, w1, g1, b1, w2, g2, b2


if __name__ == "__main__":
    fwd = jax.jit(basic_block_forward, static_argnames=("tile_hw", "batch_block"))

    # Primary shape: feat_dim=4, 16x16 images. Auto plan -> one (Bblk=2, C, 256)
    # slab per grid step (single step per sweep).
    args = _make_inputs(jax.random.PRNGKey(0), 2, 4, 16, 16)
    out = jax.block_until_ready(fwd(*args))
    ref = basic_block_reference(*args)
    assert out.shape == (2, 4, 16, 16)
    assert jnp.max(jnp.abs(out - ref)) < 1e-4, "mismatch vs reference (auto plan)"

    # Forced multi-tile plan: grid (2, 2) per sweep -> exercises multi-step
    # accumulation + per-group partial combining.
    out2 = jax.block_until_ready(fwd(*args, tile_hw=128, batch_block=1))
    assert jnp.max(jnp.abs(out2 - ref)) < 1e-4, "mismatch vs reference (multi-tile)"

    # Ragged pixel axis (HW=324 padded to 384 with tile 128) -> exercises the
    # padded-tail masking in the stats sweeps.
    args3 = _make_inputs(jax.random.PRNGKey(0), 2, 4, 18, 18)
    out3 = jax.block_until_ready(fwd(*args3, tile_hw=128, batch_block=1))
    ref3 = basic_block_reference(*args3)
    assert jnp.max(jnp.abs(out3 - ref3)) < 1e-4, "mismatch vs reference (padded)"

    print("KERNEL_OK")
</pallas_src>

<mosaic_0001>
module attributes {stable_mosaic.version = 11 : i64} {
  func.func @_stats1_kernel(%arg0: i32, %arg1: i32, %arg2: memref<2x4x256xf32, #tpu.memory_space<vmem>>, %arg3: memref<4x4xf32, #tpu.memory_space<vmem>>, %arg4: memref<1x4x1xf32, #tpu.memory_space<vmem>>, %arg5: memref<1x4x1xf32, #tpu.memory_space<vmem>>) attributes {dimension_semantics = [#tpu.dimension_semantics<parallel>, #tpu.dimension_semantics<arbitrary>], iteration_bounds = array<i64: 1, 1>, scalar_prefetch = 0 : i64, scratch_operands = 0 : i64, tpu.core_type = #tpu.core_type<tc>, window_params = [{transform_indices = @transform_0, window_bounds = array<i64: 2, 4, 256>}, {pipeline_mode = #tpu.pipeline_mode<synchronous>, transform_indices = @transform_1, window_bounds = array<i64: 4, 4>}, {transform_indices = @transform_2, window_bounds = array<i64: 1, 4, 1>}, {transform_indices = @transform_3, window_bounds = array<i64: 1, 4, 1>}]} {
    %c0_i32 = arith.constant 0 : i32
    %0 = arith.cmpi eq, %arg1, %c0_i32 : i32
    %1 = arith.extui %0 : i1 to i32
    %c0_i32_0 = arith.constant 0 : i32
    %2 = arith.cmpi ne, %1, %c0_i32_0 : i32
    scf.if %2 {
      %cst_20 = arith.constant 0.000000e+00 : f32
      %51 = vector.broadcast %cst_20 : f32 to vector<4x1xf32>
      %c0_21 = arith.constant 0 : index
      %c0_22 = arith.constant 0 : index
      %c0_23 = arith.constant 0 : index
      %52 = vector.load %arg4[%c0_21, %c0_22, %c0_23] : memref<1x4x1xf32, #tpu.memory_space<vmem>>, vector<1x4x1xf32>
      %53 = vector.shape_cast %52 : vector<1x4x1xf32> to vector<4x1xf32>
      %54 = vector.shape_cast %51 : vector<4x1xf32> to vector<1x4x1xf32>
      tpu.vector_store %arg4[%c0_21, %c0_22, %c0_23], %54 {strides = array<i32>} : memref<1x4x1xf32, #tpu.memory_space<vmem>>, vector<1x4x1xf32>,
      %cst_24 = arith.constant 0.000000e+00 : f32
      %55 = vector.broadcast %cst_24 : f32 to vector<4x1xf32>
      %c0_25 = arith.constant 0 : index
      %c0_26 = arith.constant 0 : index
      %c0_27 = arith.constant 0 : index
      %56 = vector.load %arg5[%c0_25, %c0_26, %c0_27] : memref<1x4x1xf32, #tpu.memory_space<vmem>>, vector<1x4x1xf32>
      %57 = vector.shape_cast %56 : vector<1x4x1xf32> to vector<4x1xf32>
      %58 = vector.shape_cast %55 : vector<4x1xf32> to vector<1x4x1xf32>
      tpu.vector_store %arg5[%c0_25, %c0_26, %c0_27], %58 {strides = array<i32>} : memref<1x4x1xf32, #tpu.memory_space<vmem>>, vector<1x4x1xf32>,
    } else {
    }
    %c0 = arith.constant 0 : index
    %c0_1 = arith.constant 0 : index
    %3 = vector.load %arg3[%c0, %c0_1] : memref<4x4xf32, #tpu.memory_space<vmem>>, vector<4x4xf32>
    %c0_2 = arith.constant 0 : index
    %c0_3 = arith.constant 0 : index
    %c0_4 = arith.constant 0 : index
    %4 = vector.load %arg2[%c0_2, %c0_3, %c0_4] : memref<2x4x256xf32, #tpu.memory_space<vmem>>, vector<2x4x256xf32>
    %5 = vector.extract_strided_slice %3 {offsets = [0, 0], sizes = [4, 1], strides = [1, 1]} : vector<4x4xf32> to vector<4x1xf32>
    %6 = vector.extract_strided_slice %4 {offsets = [0, 0, 0], sizes = [2, 1, 256], strides = [1, 1, 1]} : vector<2x4x256xf32> to vector<2x1x256xf32>
    %7 = vector.shape_cast %5 : vector<4x1xf32> to vector<1x4x1xf32>
    %8 = vector.broadcast %7 : vector<1x4x1xf32> to vector<2x4x256xf32>
    %9 = vector.broadcast %6 : vector<2x1x256xf32> to vector<2x4x256xf32>
    %10 = arith.mulf %8, %9 : vector<2x4x256xf32>
    %11 = vector.extract_strided_slice %3 {offsets = [0, 1], sizes = [4, 1], strides = [1, 1]} : vector<4x4xf32> to vector<4x1xf32>
    %12 = vector.extract_strided_slice %4 {offsets = [0, 1, 0], sizes = [2, 1, 256], strides = [1, 1, 1]} : vector<2x4x256xf32> to vector<2x1x256xf32>
    %13 = vector.shape_cast %11 : vector<4x1xf32> to vector<1x4x1xf32>
    %14 = vector.broadcast %13 : vector<1x4x1xf32> to vector<2x4x256xf32>
    %15 = vector.broadcast %12 : vector<2x1x256xf32> to vector<2x4x256xf32>
    %16 = arith.mulf %14, %15 : vector<2x4x256xf32>
    %17 = arith.addf %10, %16 : vector<2x4x256xf32>
    %18 = vector.extract_strided_slice %3 {offsets = [0, 2], sizes = [4, 1], strides = [1, 1]} : vector<4x4xf32> to vector<4x1xf32>
    %19 = vector.extract_strided_slice %4 {offsets = [0, 2, 0], sizes = [2, 1, 256], strides = [1, 1, 1]} : vector<2x4x256xf32> to vector<2x1x256xf32>
    %20 = vector.shape_cast %18 : vector<4x1xf32> to vector<1x4x1xf32>
    %21 = vector.broadcast %20 : vector<1x4x1xf32> to vector<2x4x256xf32>
    %22 = vector.broadcast %19 : vector<2x1x256xf32> to vector<2x4x256xf32>
    %23 = arith.mulf %21, %22 : vector<2x4x256xf32>
    %24 = arith.addf %17, %23 : vector<2x4x256xf32>
    %25 = vector.extract_strided_slice %3 {offsets = [0, 3], sizes = [4, 1], strides = [1, 1]} : vector<4x4xf32> to vector<4x1xf32>
    %26 = vector.extract_strided_slice %4 {offsets = [0, 3, 0], sizes = [2, 1, 256], strides = [1, 1, 1]} : vector<2x4x256xf32> to vector<2x1x256xf32>
    %27 = vector.shape_cast %25 : vector<4x1xf32> to vector<1x4x1xf32>
    %28 = vector.broadcast %27 : vector<1x4x1xf32> to vector<2x4x256xf32>
    %29 = vector.broadcast %26 : vector<2x1x256xf32> to vector<2x4x256xf32>
    %30 = arith.mulf %28, %29 : vector<2x4x256xf32>
    %31 = arith.addf %24, %30 : vector<2x4x256xf32>
    %c0_5 = arith.constant 0 : index
    %c0_6 = arith.constant 0 : index
    %c0_7 = arith.constant 0 : index
    %32 = vector.load %arg4[%c0_5, %c0_6, %c0_7] : memref<1x4x1xf32, #tpu.memory_space<vmem>>, vector<1x4x1xf32>
    %33 = vector.shape_cast %32 : vector<1x4x1xf32> to vector<4x1xf32>
    %cst = arith.constant dense<0.000000e+00> : vector<2x4xf32>
    %34 = vector.multi_reduction <add>, %31, %cst [2] : vector<2x4x256xf32> to vector<2x4xf32>
    %35 = vector.shape_cast %34 : vector<2x4xf32> to vector<2x4x1xf32>
    %cst_8 = arith.constant dense<0.000000e+00> : vector<4x1xf32>
    %36 = vector.multi_reduction <add>, %35, %cst_8 [0] : vector<2x4x1xf32> to vector<4x1xf32>
    %37 = arith.addf %33, %36 : vector<4x1xf32>
    %c0_9 = arith.constant 0 : index
    %c0_10 = arith.constant 0 : index
    %c0_11 = arith.constant 0 : index
    %38 = vector.load %arg4[%c0_9, %c0_10, %c0_11] : memref<1x4x1xf32, #tpu.memory_space<vmem>>, vector<1x4x1xf32>
    %39 = vector.shape_cast %38 : vector<1x4x1xf32> to vector<4x1xf32>
    %40 = vector.shape_cast %37 : vector<4x1xf32> to vector<1x4x1xf32>
    tpu.vector_store %arg4[%c0_9, %c0_10, %c0_11], %40 {strides = array<i32>} : memref<1x4x1xf32, #tpu.memory_space<vmem>>, vector<1x4x1xf32>,
    %c0_12 = arith.constant 0 : index
    %c0_13 = arith.constant 0 : index
    %c0_14 = arith.constant 0 : index
    %41 = vector.load %arg5[%c0_12, %c0_13, %c0_14] : memref<1x4x1xf32, #tpu.memory_space<vmem>>, vector<1x4x1xf32>
    %42 = vector.shape_cast %41 : vector<1x4x1xf32> to vector<4x1xf32>
    %43 = arith.mulf %31, %31 : vector<2x4x256xf32>
    %cst_15 = arith.constant dense<0.000000e+00> : vector<2x4xf32>
    %44 = vector.multi_reduction <add>, %43, %cst_15 [2] : vector<2x4x256xf32> to vector<2x4xf32>
    %45 = vector.shape_cast %44 : vector<2x4xf32> to vector<2x4x1xf32>
    %cst_16 = arith.constant dense<0.000000e+00> : vector<4x1xf32>
    %46 = vector.multi_reduction <add>, %45, %cst_16 [0] : vector<2x4x1xf32> to vector<4x1xf32>
    %47 = arith.addf %42, %46 : vector<4x1xf32>
    %c0_17 = arith.constant 0 : index
    %c0_18 = arith.constant 0 : index
    %c0_19 = arith.constant 0 : index
    %48 = vector.load %arg5[%c0_17, %c0_18, %c0_19] : memref<1x4x1xf32, #tpu.memory_space<vmem>>, vector<1x4x1xf32>
    %49 = vector.shape_cast %48 : vector<1x4x1xf32> to vector<4x1xf32>
    %50 = vector.shape_cast %47 : vector<4x1xf32> to vector<1x4x1xf32>
    tpu.vector_store %arg5[%c0_17, %c0_18, %c0_19], %50 {strides = array<i32>} : memref<1x4x1xf32, #tpu.memory_space<vmem>>, vector<1x4x1xf32>,
    return
  }
  func.func @transform_0(%arg0: i32, %arg1: i32) -> (i32, i32, i32) {
    %c0_i32 = arith.constant 0 : i32
    %c0_i32_0 = arith.constant 0 : i32
    return %arg0, %c0_i32, %arg1 : i32, i32, i32
  }
  func.func @transform_1(%arg0: i32, %arg1: i32) -> (i32, i32) {
    %c0_i32 = arith.constant 0 : i32
    %c0_i32_0 = arith.constant 0 : i32
    %c0_i32_1 = arith.constant 0 : i32
    return %c0_i32, %c0_i32_0 : i32, i32
  }
  func.func @transform_2(%arg0: i32, %arg1: i32) -> (i32, i32, i32) {
    %c0_i32 = arith.constant 0 : i32
    %c0_i32_0 = arith.constant 0 : i32
    %c0_i32_1 = arith.constant 0 : i32
    return %arg0, %c0_i32, %c0_i32_0 : i32, i32, i32
  }
  func.func @transform_3(%arg0: i32, %arg1: i32) -> (i32, i32, i32) {
    %c0_i32 = arith.constant 0 : i32
    %c0_i32_0 = arith.constant 0 : i32
    %c0_i32_1 = arith.constant 0 : i32
    return %arg0, %c0_i32, %c0_i32_0 : i32, i32, i32
  }
}

module attributes {stable_mosaic.version = 11 : i64} {
  func.func @_stats2_kernel(%arg0: i32, %arg1: i32, %arg2: memref<2x4x256xf32, #tpu.memory_space<vmem>>, %arg3: memref<4x4xf32, #tpu.memory_space<vmem>>, %arg4: memref<4x1xf32, #tpu.memory_space<vmem>>, %arg5: memref<4x4xf32, #tpu.memory_space<vmem>>, %arg6: memref<1x4x1xf32, #tpu.memory_space<vmem>>, %arg7: memref<1x4x1xf32, #tpu.memory_space<vmem>>) attributes {dimension_semantics = [#tpu.dimension_semantics<parallel>, #tpu.dimension_semantics<arbitrary>], iteration_bounds = array<i64: 1, 1>, scalar_prefetch = 0 : i64, scratch_operands = 0 : i64, tpu.core_type = #tpu.core_type<tc>, window_params = [{transform_indices = @transform_0, window_bounds = array<i64: 2, 4, 256>}, {pipeline_mode = #tpu.pipeline_mode<synchronous>, transform_indices = @transform_1, window_bounds = array<i64: 4, 4>}, {pipeline_mode = #tpu.pipeline_mode<synchronous>, transform_indices = @transform_2, window_bounds = array<i64: 4, 1>}, {pipeline_mode = #tpu.pipeline_mode<synchronous>, transform_indices = @transform_3, window_bounds = array<i64: 4, 4>}, {transform_indices = @transform_4, window_bounds = array<i64: 1, 4, 1>}, {transform_indices = @transform_5, window_bounds = array<i64: 1, 4, 1>}]} {
    %c0_i32 = arith.constant 0 : i32
    %0 = arith.cmpi eq, %arg1, %c0_i32 : i32
    %1 = arith.extui %0 : i1 to i32
    %c0_i32_0 = arith.constant 0 : i32
    %2 = arith.cmpi ne, %1, %c0_i32_0 : i32
    scf.if %2 {
      %cst_25 = arith.constant 0.000000e+00 : f32
      %85 = vector.broadcast %cst_25 : f32 to vector<4x1xf32>
      %c0_26 = arith.constant 0 : index
      %c0_27 = arith.constant 0 : index
      %c0_28 = arith.constant 0 : index
      %86 = vector.load %arg6[%c0_26, %c0_27, %c0_28] : memref<1x4x1xf32, #tpu.memory_space<vmem>>, vector<1x4x1xf32>
      %87 = vector.shape_cast %86 : vector<1x4x1xf32> to vector<4x1xf32>
      %88 = vector.shape_cast %85 : vector<4x1xf32> to vector<1x4x1xf32>
      tpu.vector_store %arg6[%c0_26, %c0_27, %c0_28], %88 {strides = array<i32>} : memref<1x4x1xf32, #tpu.memory_space<vmem>>, vector<1x4x1xf32>,
      %cst_29 = arith.constant 0.000000e+00 : f32
      %89 = vector.broadcast %cst_29 : f32 to vector<4x1xf32>
      %c0_30 = arith.constant 0 : index
      %c0_31 = arith.constant 0 : index
      %c0_32 = arith.constant 0 : index
      %90 = vector.load %arg7[%c0_30, %c0_31, %c0_32] : memref<1x4x1xf32, #tpu.memory_space<vmem>>, vector<1x4x1xf32>
      %91 = vector.shape_cast %90 : vector<1x4x1xf32> to vector<4x1xf32>
      %92 = vector.shape_cast %89 : vector<4x1xf32> to vector<1x4x1xf32>
      tpu.vector_store %arg7[%c0_30, %c0_31, %c0_32], %92 {strides = array<i32>} : memref<1x4x1xf32, #tpu.memory_space<vmem>>, vector<1x4x1xf32>,
    } else {
    }
    %c0 = arith.constant 0 : index
    %c0_1 = arith.constant 0 : index
    %3 = vector.load %arg3[%c0, %c0_1] : memref<4x4xf32, #tpu.memory_space<vmem>>, vector<4x4xf32>
    %c0_2 = arith.constant 0 : index
    %c0_3 = arith.constant 0 : index
    %c0_4 = arith.constant 0 : index
    %4 = vector.load %arg2[%c0_2, %c0_3, %c0_4] : memref<2x4x256xf32, #tpu.memory_space<vmem>>, vector<2x4x256xf32>
    %5 = vector.extract_strided_slice %3 {offsets = [0, 0], sizes = [4, 1], strides = [1, 1]} : vector<4x4xf32> to vector<4x1xf32>
    %6 = vector.extract_strided_slice %4 {offsets = [0, 0, 0], sizes = [2, 1, 256], strides = [1, 1, 1]} : vector<2x4x256xf32> to vector<2x1x256xf32>
    %7 = vector.shape_cast %5 : vector<4x1xf32> to vector<1x4x1xf32>
    %8 = vector.broadcast %7 : vector<1x4x1xf32> to vector<2x4x256xf32>
    %9 = vector.broadcast %6 : vector<2x1x256xf32> to vector<2x4x256xf32>
    %10 = arith.mulf %8, %9 : vector<2x4x256xf32>
    %11 = vector.extract_strided_slice %3 {offsets = [0, 1], sizes = [4, 1], strides = [1, 1]} : vector<4x4xf32> to vector<4x1xf32>
    %12 = vector.extract_strided_slice %4 {offsets = [0, 1, 0], sizes = [2, 1, 256], strides = [1, 1, 1]} : vector<2x4x256xf32> to vector<2x1x256xf32>
    %13 = vector.shape_cast %11 : vector<4x1xf32> to vector<1x4x1xf32>
    %14 = vector.broadcast %13 : vector<1x4x1xf32> to vector<2x4x256xf32>
    %15 = vector.broadcast %12 : vector<2x1x256xf32> to vector<2x4x256xf32>
    %16 = arith.mulf %14, %15 : vector<2x4x256xf32>
    %17 = arith.addf %10, %16 : vector<2x4x256xf32>
    %18 = vector.extract_strided_slice %3 {offsets = [0, 2], sizes = [4, 1], strides = [1, 1]} : vector<4x4xf32> to vector<4x1xf32>
    %19 = vector.extract_strided_slice %4 {offsets = [0, 2, 0], sizes = [2, 1, 256], strides = [1, 1, 1]} : vector<2x4x256xf32> to vector<2x1x256xf32>
    %20 = vector.shape_cast %18 : vector<4x1xf32> to vector<1x4x1xf32>
    %21 = vector.broadcast %20 : vector<1x4x1xf32> to vector<2x4x256xf32>
    %22 = vector.broadcast %19 : vector<2x1x256xf32> to vector<2x4x256xf32>
    %23 = arith.mulf %21, %22 : vector<2x4x256xf32>
    %24 = arith.addf %17, %23 : vector<2x4x256xf32>
    %25 = vector.extract_strided_slice %3 {offsets = [0, 3], sizes = [4, 1], strides = [1, 1]} : vector<4x4xf32> to vector<4x1xf32>
    %26 = vector.extract_strided_slice %4 {offsets = [0, 3, 0], sizes = [2, 1, 256], strides = [1, 1, 1]} : vector<2x4x256xf32> to vector<2x1x256xf32>
    %27 = vector.shape_cast %25 : vector<4x1xf32> to vector<1x4x1xf32>
    %28 = vector.broadcast %27 : vector<1x4x1xf32> to vector<2x4x256xf32>
    %29 = vector.broadcast %26 : vector<2x1x256xf32> to vector<2x4x256xf32>
    %30 = arith.mulf %28, %29 : vector<2x4x256xf32>
    %31 = arith.addf %24, %30 : vector<2x4x256xf32>
    %c0_5 = arith.constant 0 : index
    %c0_6 = arith.constant 0 : index
    %32 = vector.load %arg4[%c0_5, %c0_6] : memref<4x1xf32, #tpu.memory_space<vmem>>, vector<4x1xf32>
    %33 = vector.shape_cast %32 : vector<4x1xf32> to vector<1x4x1xf32>
    %34 = vector.broadcast %33 : vector<1x4x1xf32> to vector<2x4x256xf32>
    %35 = arith.addf %31, %34 : vector<2x4x256xf32>
    %cst = arith.constant 0.000000e+00 : f32
    %36 = vector.broadcast %cst : f32 to vector<2x4x256xf32>
    %37 = arith.maximumf %35, %36 : vector<2x4x256xf32>
    %c0_7 = arith.constant 0 : index
    %c0_8 = arith.constant 0 : index
    %38 = vector.load %arg5[%c0_7, %c0_8] : memref<4x4xf32, #tpu.memory_space<vmem>>, vector<4x4xf32>
    %39 = vector.extract_strided_slice %38 {offsets = [0, 0], sizes = [4, 1], strides = [1, 1]} : vector<4x4xf32> to vector<4x1xf32>
    %40 = vector.extract_strided_slice %37 {offsets = [0, 0, 0], sizes = [2, 1, 256], strides = [1, 1, 1]} : vector<2x4x256xf32> to vector<2x1x256xf32>
    %41 = vector.shape_cast %39 : vector<4x1xf32> to vector<1x4x1xf32>
    %42 = vector.broadcast %41 : vector<1x4x1xf32> to vector<2x4x256xf32>
    %43 = vector.broadcast %40 : vector<2x1x256xf32> to vector<2x4x256xf32>
    %44 = arith.mulf %42, %43 : vector<2x4x256xf32>
    %45 = vector.extract_strided_slice %38 {offsets = [0, 1], sizes = [4, 1], strides = [1, 1]} : vector<4x4xf32> to vector<4x1xf32>
    %46 = vector.extract_strided_slice %37 {offsets = [0, 1, 0], sizes = [2, 1, 256], strides = [1, 1, 1]} : vector<2x4x256xf32> to vector<2x1x256xf32>
    %47 = vector.shape_cast %45 : vector<4x1xf32> to vector<1x4x1xf32>
    %48 = vector.broadcast %47 : vector<1x4x1xf32> to vector<2x4x256xf32>
    %49 = vector.broadcast %46 : vector<2x1x256xf32> to vector<2x4x256xf32>
    %50 = arith.mulf %48, %49 : vector<2x4x256xf32>
    %51 = arith.addf %44, %50 : vector<2x4x256xf32>
    %52 = vector.extract_strided_slice %38 {offsets = [0, 2], sizes = [4, 1], strides = [1, 1]} : vector<4x4xf32> to vector<4x1xf32>
    %53 = vector.extract_strided_slice %37 {offsets = [0, 2, 0], sizes = [2, 1, 256], strides = [1, 1, 1]} : vector<2x4x256xf32> to vector<2x1x256xf32>
    %54 = vector.shape_cast %52 : vector<4x1xf32> to vector<1x4x1xf32>
    %55 = vector.broadcast %54 : vector<1x4x1xf32> to vector<2x4x256xf32>
    %56 = vector.broadcast %53 : vector<2x1x256xf32> to vector<2x4x256xf32>
    %57 = arith.mulf %55, %56 : vector<2x4x256xf32>
    %58 = arith.addf %51, %57 : vector<2x4x256xf32>
    %59 = vector.extract_strided_slice %38 {offsets = [0, 3], sizes = [4, 1], strides = [1, 1]} : vector<4x4xf32> to vector<4x1xf32>
    %60 = vector.extract_strided_slice %37 {offsets = [0, 3, 0], sizes = [2, 1, 256], strides = [1, 1, 1]} : vector<2x4x256xf32> to vector<2x1x256xf32>
    %61 = vector.shape_cast %59 : vector<4x1xf32> to vector<1x4x1xf32>
    %62 = vector.broadcast %61 : vector<1x4x1xf32> to vector<2x4x256xf32>
    %63 = vector.broadcast %60 : vector<2x1x256xf32> to vector<2x4x256xf32>
    %64 = arith.mulf %62, %63 : vector<2x4x256xf32>
    %65 = arith.addf %58, %64 : vector<2x4x256xf32>
    %c0_9 = arith.constant 0 : index
    %c0_10 = arith.constant 0 : index
    %c0_11 = arith.constant 0 : index
    %66 = vector.load %arg6[%c0_9, %c0_10, %c0_11] : memref<1x4x1xf32, #tpu.memory_space<vmem>>, vector<1x4x1xf32>
    %67 = vector.shape_cast %66 : vector<1x4x1xf32> to vector<4x1xf32>
    %cst_12 = arith.constant dense<0.000000e+00> : vector<2x4xf32>
    %68 = vector.multi_reduction <add>, %65, %cst_12 [2] : vector<2x4x256xf32> to vector<2x4xf32>
    %69 = vector.shape_cast %68 : vector<2x4xf32> to vector<2x4x1xf32>
    %cst_13 = arith.constant dense<0.000000e+00> : vector<4x1xf32>
    %70 = vector.multi_reduction <add>, %69, %cst_13 [0] : vector<2x4x1xf32> to vector<4x1xf32>
    %71 = arith.addf %67, %70 : vector<4x1xf32>
    %c0_14 = arith.constant 0 : index
    %c0_15 = arith.constant 0 : index
    %c0_16 = arith.constant 0 : index
    %72 = vector.load %arg6[%c0_14, %c0_15, %c0_16] : memref<1x4x1xf32, #tpu.memory_space<vmem>>, vector<1x4x1xf32>
    %73 = vector.shape_cast %72 : vector<1x4x1xf32> to vector<4x1xf32>
    %74 = vector.shape_cast %71 : vector<4x1xf32> to vector<1x4x1xf32>
    tpu.vector_store %arg6[%c0_14, %c0_15, %c0_16], %74 {strides = array<i32>} : memref<1x4x1xf32, #tpu.memory_space<vmem>>, vector<1x4x1xf32>,
    %c0_17 = arith.constant 0 : index
    %c0_18 = arith.constant 0 : index
    %c0_19 = arith.constant 0 : index
    %75 = vector.load %arg7[%c0_17, %c0_18, %c0_19] : memref<1x4x1xf32, #tpu.memory_space<vmem>>, vector<1x4x1xf32>
    %76 = vector.shape_cast %75 : vector<1x4x1xf32> to vector<4x1xf32>
    %77 = arith.mulf %65, %65 : vector<2x4x256xf32>
    %cst_20 = arith.constant dense<0.000000e+00> : vector<2x4xf32>
    %78 = vector.multi_reduction <add>, %77, %cst_20 [2] : vector<2x4x256xf32> to vector<2x4xf32>
    %79 = vector.shape_cast %78 : vector<2x4xf32> to vector<2x4x1xf32>
    %cst_21 = arith.constant dense<0.000000e+00> : vector<4x1xf32>
    %80 = vector.multi_reduction <add>, %79, %cst_21 [0] : vector<2x4x1xf32> to vector<4x1xf32>
    %81 = arith.addf %76, %80 : vector<4x1xf32>
    %c0_22 = arith.constant 0 : index
    %c0_23 = arith.constant 0 : index
    %c0_24 = arith.constant 0 : index
    %82 = vector.load %arg7[%c0_22, %c0_23, %c0_24] : memref<1x4x1xf32, #tpu.memory_space<vmem>>, vector<1x4x1xf32>
    %83 = vector.shape_cast %82 : vector<1x4x1xf32> to vector<4x1xf32>
    %84 = vector.shape_cast %81 : vector<4x1xf32> to vector<1x4x1xf32>
    tpu.vector_store %arg7[%c0_22, %c0_23, %c0_24], %84 {strides = array<i32>} : memref<1x4x1xf32, #tpu.memory_space<vmem>>, vector<1x4x1xf32>,
    return
  }
  func.func @transform_0(%arg0: i32, %arg1: i32) -> (i32, i32, i32) {
    %c0_i32 = arith.constant 0 : i32
    %c0_i32_0 = arith.constant 0 : i32
    return %arg0, %c0_i32, %arg1 : i32, i32, i32
  }
  func.func @transform_1(%arg0: i32, %arg1: i32) -> (i32, i32) {
    %c0_i32 = arith.constant 0 : i32
    %c0_i32_0 = arith.constant 0 : i32
    %c0_i32_1 = arith.constant 0 : i32
    return %c0_i32, %c0_i32_0 : i32, i32
  }
  func.func @transform_2(%arg0: i32, %arg1: i32) -> (i32, i32) {
    %c0_i32 = arith.constant 0 : i32
    %c0_i32_0 = arith.constant 0 : i32
    %c0_i32_1 = arith.constant 0 : i32
    return %c0_i32, %c0_i32_0 : i32, i32
  }
  func.func @transform_3(%arg0: i32, %arg1: i32) -> (i32, i32) {
    %c0_i32 = arith.constant 0 : i32
    %c0_i32_0 = arith.constant 0 : i32
    %c0_i32_1 = arith.constant 0 : i32
    return %c0_i32, %c0_i32_0 : i32, i32
  }
  func.func @transform_4(%arg0: i32, %arg1: i32) -> (i32, i32, i32) {
    %c0_i32 = arith.constant 0 : i32
    %c0_i32_0 = arith.constant 0 : i32
    %c0_i32_1 = arith.constant 0 : i32
    return %arg0, %c0_i32, %c0_i32_0 : i32, i32, i32
  }
  func.func @transform_5(%arg0: i32, %arg1: i32) -> (i32, i32, i32) {
    %c0_i32 = arith.constant 0 : i32
    %c0_i32_0 = arith.constant 0 : i32
    %c0_i32_1 = arith.constant 0 : i32
    return %arg0, %c0_i32, %c0_i32_0 : i32, i32, i32
  }
}

module attributes {stable_mosaic.version = 11 : i64} {
  func.func @_apply_kernel(%arg0: i32, %arg1: i32, %arg2: memref<2x4x256xf32, #tpu.memory_space<vmem>>, %arg3: memref<2x1x1xf32, #tpu.memory_space<vmem>>, %arg4: memref<4x4xf32, #tpu.memory_space<vmem>>, %arg5: memref<4x1xf32, #tpu.memory_space<vmem>>, %arg6: memref<4x4xf32, #tpu.memory_space<vmem>>, %arg7: memref<4x1xf32, #tpu.memory_space<vmem>>, %arg8: memref<2x4x256xf32, #tpu.memory_space<vmem>>) attributes {dimension_semantics = [#tpu.dimension_semantics<parallel>, #tpu.dimension_semantics<parallel>], iteration_bounds = array<i64: 1, 1>, scalar_prefetch = 0 : i64, scratch_operands = 0 : i64, tpu.core_type = #tpu.core_type<tc>, window_params = [{transform_indices = @transform_0, window_bounds = array<i64: 2, 4, 256>}, {transform_indices = @transform_1, window_bounds = array<i64: 2, 1, 1>}, {pipeline_mode = #tpu.pipeline_mode<synchronous>, transform_indices = @transform_2, window_bounds = array<i64: 4, 4>}, {pipeline_mode = #tpu.pipeline_mode<synchronous>, transform_indices = @transform_3, window_bounds = array<i64: 4, 1>}, {pipeline_mode = #tpu.pipeline_mode<synchronous>, transform_indices = @transform_4, window_bounds = array<i64: 4, 4>}, {pipeline_mode = #tpu.pipeline_mode<synchronous>, transform_indices = @transform_5, window_bounds = array<i64: 4, 1>}, {transform_indices = @transform_6, window_bounds = array<i64: 2, 4, 256>}]} {
    %c0 = arith.constant 0 : index
    %c0_0 = arith.constant 0 : index
    %c0_1 = arith.constant 0 : index
    %0 = vector.load %arg2[%c0, %c0_0, %c0_1] : memref<2x4x256xf32, #tpu.memory_space<vmem>>, vector<2x4x256xf32>
    %c0_2 = arith.constant 0 : index
    %c0_3 = arith.constant 0 : index
    %1 = vector.load %arg4[%c0_2, %c0_3] : memref<4x4xf32, #tpu.memory_space<vmem>>, vector<4x4xf32>
    %2 = vector.extract_strided_slice %1 {offsets = [0, 0], sizes = [4, 1], strides = [1, 1]} : vector<4x4xf32> to vector<4x1xf32>
    %3 = vector.extract_strided_slice %0 {offsets = [0, 0, 0], sizes = [2, 1, 256], strides = [1, 1, 1]} : vector<2x4x256xf32> to vector<2x1x256xf32>
    %4 = vector.shape_cast %2 : vector<4x1xf32> to vector<1x4x1xf32>
    %5 = vector.broadcast %4 : vector<1x4x1xf32> to vector<2x4x256xf32>
    %6 = vector.broadcast %3 : vector<2x1x256xf32> to vector<2x4x256xf32>
    %7 = arith.mulf %5, %6 : vector<2x4x256xf32>
    %8 = vector.extract_strided_slice %1 {offsets = [0, 1], sizes = [4, 1], strides = [1, 1]} : vector<4x4xf32> to vector<4x1xf32>
    %9 = vector.extract_strided_slice %0 {offsets = [0, 1, 0], sizes = [2, 1, 256], strides = [1, 1, 1]} : vector<2x4x256xf32> to vector<2x1x256xf32>
    %10 = vector.shape_cast %8 : vector<4x1xf32> to vector<1x4x1xf32>
    %11 = vector.broadcast %10 : vector<1x4x1xf32> to vector<2x4x256xf32>
    %12 = vector.broadcast %9 : vector<2x1x256xf32> to vector<2x4x256xf32>
    %13 = arith.mulf %11, %12 : vector<2x4x256xf32>
    %14 = arith.addf %7, %13 : vector<2x4x256xf32>
    %15 = vector.extract_strided_slice %1 {offsets = [0, 2], sizes = [4, 1], strides = [1, 1]} : vector<4x4xf32> to vector<4x1xf32>
    %16 = vector.extract_strided_slice %0 {offsets = [0, 2, 0], sizes = [2, 1, 256], strides = [1, 1, 1]} : vector<2x4x256xf32> to vector<2x1x256xf32>
    %17 = vector.shape_cast %15 : vector<4x1xf32> to vector<1x4x1xf32>
    %18 = vector.broadcast %17 : vector<1x4x1xf32> to vector<2x4x256xf32>
    %19 = vector.broadcast %16 : vector<2x1x256xf32> to vector<2x4x256xf32>
    %20 = arith.mulf %18, %19 : vector<2x4x256xf32>
    %21 = arith.addf %14, %20 : vector<2x4x256xf32>
    %22 = vector.extract_strided_slice %1 {offsets = [0, 3], sizes = [4, 1], strides = [1, 1]} : vector<4x4xf32> to vector<4x1xf32>
    %23 = vector.extract_strided_slice %0 {offsets = [0, 3, 0], sizes = [2, 1, 256], strides = [1, 1, 1]} : vector<2x4x256xf32> to vector<2x1x256xf32>
    %24 = vector.shape_cast %22 : vector<4x1xf32> to vector<1x4x1xf32>
    %25 = vector.broadcast %24 : vector<1x4x1xf32> to vector<2x4x256xf32>
    %26 = vector.broadcast %23 : vector<2x1x256xf32> to vector<2x4x256xf32>
    %27 = arith.mulf %25, %26 : vector<2x4x256xf32>
    %28 = arith.addf %21, %27 : vector<2x4x256xf32>
    %c0_4 = arith.constant 0 : index
    %c0_5 = arith.constant 0 : index
    %29 = vector.load %arg5[%c0_4, %c0_5] : memref<4x1xf32, #tpu.memory_space<vmem>>, vector<4x1xf32>
    %30 = vector.shape_cast %29 : vector<4x1xf32> to vector<1x4x1xf32>
    %31 = vector.broadcast %30 : vector<1x4x1xf32> to vector<2x4x256xf32>
    %32 = arith.addf %28, %31 : vector<2x4x256xf32>
    %cst = arith.constant 0.000000e+00 : f32
    %33 = vector.broadcast %cst : f32 to vector<2x4x256xf32>
    %34 = arith.maximumf %32, %33 : vector<2x4x256xf32>
    %c0_6 = arith.constant 0 : index
    %c0_7 = arith.constant 0 : index
    %35 = vector.load %arg6[%c0_6, %c0_7] : memref<4x4xf32, #tpu.memory_space<vmem>>, vector<4x4xf32>
    %36 = vector.extract_strided_slice %35 {offsets = [0, 0], sizes = [4, 1], strides = [1, 1]} : vector<4x4xf32> to vector<4x1xf32>
    %37 = vector.extract_strided_slice %34 {offsets = [0, 0, 0], sizes = [2, 1, 256], strides = [1, 1, 1]} : vector<2x4x256xf32> to vector<2x1x256xf32>
    %38 = vector.shape_cast %36 : vector<4x1xf32> to vector<1x4x1xf32>
    %39 = vector.broadcast %38 : vector<1x4x1xf32> to vector<2x4x256xf32>
    %40 = vector.broadcast %37 : vector<2x1x256xf32> to vector<2x4x256xf32>
    %41 = arith.mulf %39, %40 : vector<2x4x256xf32>
    %42 = vector.extract_strided_slice %35 {offsets = [0, 1], sizes = [4, 1], strides = [1, 1]} : vector<4x4xf32> to vector<4x1xf32>
    %43 = vector.extract_strided_slice %34 {offsets = [0, 1, 0], sizes = [2, 1, 256], strides = [1, 1, 1]} : vector<2x4x256xf32> to vector<2x1x256xf32>
    %44 = vector.shape_cast %42 : vector<4x1xf32> to vector<1x4x1xf32>
    %45 = vector.broadcast %44 : vector<1x4x1xf32> to vector<2x4x256xf32>
    %46 = vector.broadcast %43 : vector<2x1x256xf32> to vector<2x4x256xf32>
    %47 = arith.mulf %45, %46 : vector<2x4x256xf32>
    %48 = arith.addf %41, %47 : vector<2x4x256xf32>
    %49 = vector.extract_strided_slice %35 {offsets = [0, 2], sizes = [4, 1], strides = [1, 1]} : vector<4x4xf32> to vector<4x1xf32>
    %50 = vector.extract_strided_slice %34 {offsets = [0, 2, 0], sizes = [2, 1, 256], strides = [1, 1, 1]} : vector<2x4x256xf32> to vector<2x1x256xf32>
    %51 = vector.shape_cast %49 : vector<4x1xf32> to vector<1x4x1xf32>
    %52 = vector.broadcast %51 : vector<1x4x1xf32> to vector<2x4x256xf32>
    %53 = vector.broadcast %50 : vector<2x1x256xf32> to vector<2x4x256xf32>
    %54 = arith.mulf %52, %53 : vector<2x4x256xf32>
    %55 = arith.addf %48, %54 : vector<2x4x256xf32>
    %56 = vector.extract_strided_slice %35 {offsets = [0, 3], sizes = [4, 1], strides = [1, 1]} : vector<4x4xf32> to vector<4x1xf32>
    %57 = vector.extract_strided_slice %34 {offsets = [0, 3, 0], sizes = [2, 1, 256], strides = [1, 1, 1]} : vector<2x4x256xf32> to vector<2x1x256xf32>
    %58 = vector.shape_cast %56 : vector<4x1xf32> to vector<1x4x1xf32>
    %59 = vector.broadcast %58 : vector<1x4x1xf32> to vector<2x4x256xf32>
    %60 = vector.broadcast %57 : vector<2x1x256xf32> to vector<2x4x256xf32>
    %61 = arith.mulf %59, %60 : vector<2x4x256xf32>
    %62 = arith.addf %55, %61 : vector<2x4x256xf32>
    %c0_8 = arith.constant 0 : index
    %c0_9 = arith.constant 0 : index
    %63 = vector.load %arg7[%c0_8, %c0_9] : memref<4x1xf32, #tpu.memory_space<vmem>>, vector<4x1xf32>
    %64 = vector.shape_cast %63 : vector<4x1xf32> to vector<1x4x1xf32>
    %65 = vector.broadcast %64 : vector<1x4x1xf32> to vector<2x4x256xf32>
    %66 = arith.addf %62, %65 : vector<2x4x256xf32>
    %c0_10 = arith.constant 0 : index
    %c0_11 = arith.constant 0 : index
    %c0_12 = arith.constant 0 : index
    %67 = vector.load %arg3[%c0_10, %c0_11, %c0_12] : memref<2x1x1xf32, #tpu.memory_space<vmem>>, vector<2x1x1xf32>
    %68 = vector.broadcast %67 : vector<2x1x1xf32> to vector<2x4x256xf32>
    %69 = arith.mulf %68, %66 : vector<2x4x256xf32>
    %70 = arith.addf %69, %0 : vector<2x4x256xf32>
    %cst_13 = arith.constant 0.000000e+00 : f32
    %71 = vector.broadcast %cst_13 : f32 to vector<2x4x256xf32>
    %72 = arith.maximumf %70, %71 : vector<2x4x256xf32>
    %c0_14 = arith.constant 0 : index
    %c0_15 = arith.constant 0 : index
    %c0_16 = arith.constant 0 : index
    %73 = vector.load %arg8[%c0_14, %c0_15, %c0_16] : memref<2x4x256xf32, #tpu.memory_space<vmem>>, vector<2x4x256xf32>
    tpu.vector_store %arg8[%c0_14, %c0_15, %c0_16], %72 {strides = array<i32>} : memref<2x4x256xf32, #tpu.memory_space<vmem>>, vector<2x4x256xf32>,
    return
  }
  func.func @transform_0(%arg0: i32, %arg1: i32) -> (i32, i32, i32) {
    %c0_i32 = arith.constant 0 : i32
    %c0_i32_0 = arith.constant 0 : i32
    return %arg0, %c0_i32, %arg1 : i32, i32, i32
  }
  func.func @transform_1(%arg0: i32, %arg1: i32) -> (i32, i32, i32) {
    %c0_i32 = arith.constant 0 : i32
    %c0_i32_0 = arith.constant 0 : i32
    %c0_i32_1 = arith.constant 0 : i32
    return %arg0, %c0_i32, %c0_i32_0 : i32, i32, i32
  }
  func.func @transform_2(%arg0: i32, %arg1: i32) -> (i32, i32) {
    %c0_i32 = arith.constant 0 : i32
    %c0_i32_0 = arith.constant 0 : i32
    %c0_i32_1 = arith.constant 0 : i32
    return %c0_i32, %c0_i32_0 : i32, i32
  }
  func.func @transform_3(%arg0: i32, %arg1: i32) -> (i32, i32) {
    %c0_i32 = arith.constant 0 : i32
    %c0_i32_0 = arith.constant 0 : i32
    %c0_i32_1 = arith.constant 0 : i32
    return %c0_i32, %c0_i32_0 : i32, i32
  }
  func.func @transform_4(%arg0: i32, %arg1: i32) -> (i32, i32) {
    %c0_i32 = arith.constant 0 : i32
    %c0_i32_0 = arith.constant 0 : i32
    %c0_i32_1 = arith.constant 0 : i32
    return %c0_i32, %c0_i32_0 : i32, i32
  }
  func.func @transform_5(%arg0: i32, %arg1: i32) -> (i32, i32) {
    %c0_i32 = arith.constant 0 : i32
    %c0_i32_0 = arith.constant 0 : i32
    %c0_i32_1 = arith.constant 0 : i32
    return %c0_i32, %c0_i32_0 : i32, i32
  }
  func.func @transform_6(%arg0: i32, %arg1: i32) -> (i32, i32, i32) {
    %c0_i32 = arith.constant 0 : i32
    %c0_i32_0 = arith.constant 0 : i32
    return %arg0, %c0_i32, %arg1 : i32, i32, i32
  }
}

</mosaic_0001>

<bundles_post_ra>
// kernel: basic_block_forward.3
= control target key start
LH: loop header
LB: loop body
LE: loop exit
PB: predicated region body
PF: predicated region fallthrough
CT: control target
= control target key end

     0   :  { %v270_v0 = vmov 0   ;;  %v271_v2 = vmov 2   ;;  %v272_v3 = vmov 1   ;;  %v273_v4 = vmov 3   ;;  %s338_s1 = inlined_call_operand.vmem [shape: f32[4,4], index: 1, kind: input, shape index: {}]   ;;  %s339_s0 = inlined_call_operand.vmem [shape: f32[2,4,256], index: 0, kind: input, shape index: {}]   ;;  %s340_s2 = inlined_call_operand.vmem [shape: f32[1,4,1], index: 2, kind: output, shape index: {0}]   ;;  %s341_s3 = inlined_call_operand.vmem [shape: f32[1,4,1], index: 3, kind: output, shape index: {1}]  }
   0x1   :  { %265 = vset.pattern.permute.xlu0 %v270_v0  ;;  %v20_v1 = vld [vmem:[%s338_s1] sm:$0xf]  ;;  %267 = vset.pattern.permute.xlu1 %v271_v2  ;;  %v30_v5 = vlaneseq  ;;  %v22_v10 = vld [vmem:[%s339_s0 + $0x8] sm:$0xff]  ;;  %vm215_vm0 = vcmask 1043456   ;;  %vm17_vm1 = vcmask 3072  }
   0x2   :  { %25 = vperm.xlu0 %265, %v20_v1   ;;  %119 = vperm.xlu1 %267, %v20_v1   ;;  %v21_v9 = vld [vmem:[%s339_s0] sm:$0xff] }
   0x3   :  { %v31_v6 = vshrl.u32 %v30_v5, 7 }
   0x5   :  { %v32_v7 = vsub.s32 0, %v31_v6  ;;  %v36_v8 = vsub.s32 4, %v31_v6  ;;  %v124_v11 = vsub.s32 2, %v31_v6  ;;  %v128_v12 = vsub.s32 6, %v31_v6 }
   0x6   :  { %266 = vset.pattern.permute.xlu0 %v272_v3  ;;  %268 = vset.pattern.permute.xlu1 %v273_v4  ;;  %v76_v13 = vsub.s32 1, %v31_v6  ;;  %v80_v14 = vsub.s32 5, %v31_v6  ;;  %v172_v15 = vsub.s32 3, %v31_v6  ;;  %v176_v16 = vsub.s32 7, %v31_v6 }
   0x7   :  { %71 = vperm.xlu0 %266, %v20_v1   ;;  %167 = vperm.xlu1 %268, %v20_v1   ;;  %v33_v17 = vrot.slane %v21_v9, %v32_v7  ;;  %v37_v18 = vrot.slane %v21_v9, %v36_v8  ;;  %v41_v19 = vrot.slane %v22_v10, %v32_v7 }
   0x8   :  { %v45_v20 = vrot.slane %v22_v10, %v36_v8  ;;  %v125_v21 = vrot.slane %v21_v9, %v124_v11  ;;  %v129_v22 = vrot.slane %v21_v9, %v128_v12  ;;  %v133_v23 = vrot.slane %v22_v10, %v124_v11 }
   0x9   :  { %v137_v24 = vrot.slane %v22_v10, %v128_v12  ;;  %v77_v25 = vrot.slane %v21_v9, %v76_v13  ;;  %v81_v26 = vrot.slane %v21_v9, %v80_v14  ;;  %v85_v27 = vrot.slane %v22_v10, %v76_v13 }
   0xa   :  { %v89_v28 = vrot.slane %v22_v10, %v80_v14  ;;  %v173_v29 = vrot.slane %v21_v9, %v172_v15  ;;  %v177_v30 = vrot.slane %v21_v9, %v176_v16  ;;  %v181_v31 = vrot.slane %v22_v10, %v172_v15 }
   0xb   :  { %269 = vset.pattern.permute.xlu0 %v273_v4  ;;  %v185_v32 = vrot.slane %v22_v10, %v176_v16  ;;  %v53_v34 = vrot.slane %v33_v17, %v32_v7  ;;  %v57_v35 = vrot.slane %v37_v18, %v32_v7  ;;  %v61_v36 = vrot.slane %v41_v19, %v32_v7 }
   0xc   :  { %v65_v37 = vrot.slane %v45_v20, %v32_v7  ;;  %v145_v39 = vrot.slane %v125_v21, %v124_v11  ;;  %v149_v40 = vrot.slane %v129_v22, %v124_v11  ;;  %v153_v41 = vrot.slane %v133_v23, %v124_v11 }
   0xd   :  { %v157_v42 = vrot.slane %v137_v24, %v124_v11  ;;  %v97_v43 = vrot.slane %v77_v25, %v76_v13  ;;  %v101_v44 = vrot.slane %v81_v26, %v76_v13  ;;  %v105_v45 = vrot.slane %v85_v27, %v76_v13 }
   0xe   :  { %v109_v46 = vrot.slane %v89_v28, %v76_v13  ;;  %v193_v47 = vrot.slane %v173_v29, %v172_v15  ;;  %v197_v48 = vrot.slane %v177_v30, %v172_v15  ;;  %v201_v49 = vrot.slane %v181_v31, %v172_v15 }
   0xf   :  { %v205_v50 = vrot.slane %v185_v32, %v172_v15 }
  0x81   :  { %v26_v33 = vpop.permute.xlu0 %25  ;;  %v120_v38 = vpop.permute.xlu1 %119 }
  0x82   :  { %v66_v51 = vmul.f32 %v53_v34, %v26_v33  ;;  %v67_v52 = vmul.f32 %v57_v35, %v26_v33  ;;  %v68_v53 = vmul.f32 %v61_v36, %v26_v33  ;;  %v69_v54 = vmul.f32 %v65_v37, %v26_v33 }
  0x83   :  { %v158_v55 = vmul.f32 %v145_v39, %v120_v38  ;;  %v159_v56 = vmul.f32 %v149_v40, %v120_v38  ;;  %v160_v57 = vmul.f32 %v153_v41, %v120_v38  ;;  %v161_v58 = vmul.f32 %v157_v42, %v120_v38 }
  0x84   :  { %v274_v33 = vmov 0.0  }
  0x85   :  { %18 = vst.msk [vmem:[%s340_s2] sm:$0xf] %vm17_vm1, %v274_v33  ;;  %19 = vst.msk [vmem:[%s341_s3] sm:$0xf] %vm17_vm1, %v274_v33 }
  0x86   :  { %v72_v59 = vpop.permute.xlu0 %71  ;;  %v168_v60 = vpop.permute.xlu1 %167 }
  0x87   :  { %v110_v61 = vmul.f32 %v97_v43, %v72_v59  ;;  %v111_v62 = vmul.f32 %v101_v44, %v72_v59  ;;  %v112_v63 = vmul.f32 %v105_v45, %v72_v59  ;;  %v113_v0 = vmul.f32 %v109_v46, %v72_v59 }
  0x88   :  { %v206_v1 = vmul.f32 %v193_v47, %v168_v60  ;;  %v207_v2 = vmul.f32 %v197_v48, %v168_v60  ;;  %v208_v3 = vmul.f32 %v201_v49, %v168_v60  ;;  %v209_v4 = vmul.f32 %v205_v50, %v168_v60 }
  0x89   :  { %v114_v5 = vadd.f32 %v110_v61, %v66_v51  ;;  %v115_v6 = vadd.f32 %v111_v62, %v67_v52  ;;  %v116_v7 = vadd.f32 %v112_v63, %v68_v53  ;;  %v117_v8 = vadd.f32 %v113_v0, %v69_v54 }
  0x8b   :  { %v164_v9 = vadd.f32 %v160_v57, %v116_v7  ;;  %v165_v10 = vadd.f32 %v161_v58, %v117_v8  ;;  %v162_v11 = vadd.f32 %v158_v55, %v114_v5  ;;  %v163_v12 = vadd.f32 %v159_v56, %v115_v6 }
  0x8c   :  { %v214_v37 = vld [vmem:[%s340_s2] sm:$0xf] }
  0x8d   :  { %v212_v13 = vadd.f32 %v208_v3, %v164_v9  ;;  %v213_v14 = vadd.f32 %v209_v4, %v165_v10  ;;  %v210_v15 = vadd.f32 %v206_v1, %v162_v11  ;;  %v211_v16 = vadd.f32 %v207_v2, %v163_v12  ;;  %v232_v44 = vld [vmem:[%s341_s3] sm:$0xf] }
  0x8f   :  { %v221_v17 = vsel %vm215_vm0, %v212_v13, 0.0  ;;  %v222_v18 = vsel %vm215_vm0, %v213_v14, 0.0  ;;  %v216_v19 = vsel %vm215_vm0, %v210_v15, 0.0  ;;  %v217_v20 = vsel %vm215_vm0, %v211_v16, 0.0 }
  0x90   :  { %v223_v21 = vadd.f32 %v222_v18, %v221_v17  ;;  %v218_v22 = vadd.f32 %v217_v20, %v216_v19  ;;  %v233_v23 = vmul.f32 %v210_v15, %v210_v15  ;;  %v234_v24 = vmul.f32 %v211_v16, %v211_v16 }
  0x91   :  { %v235_v25 = vmul.f32 %v212_v13, %v212_v13  ;;  %v236_v26 = vmul.f32 %v213_v14, %v213_v14 }
  0x92   :  { %224 = vadd.xlane.f32.xlu0 %v223_v21  ;;  %219 = vadd.xlane.f32.xlu1 %v218_v22  ;;  %v237_v27 = vsel %vm215_vm0, %v233_v23, 0.0  ;;  %v238_v28 = vsel %vm215_vm0, %v234_v24, 0.0 }
  0x93   :  { %v242_v29 = vsel %vm215_vm0, %v235_v25, 0.0  ;;  %v243_v30 = vsel %vm215_vm0, %v236_v26, 0.0  ;;  %v239_v31 = vadd.f32 %v238_v28, %v237_v27 }
  0x94   :  { %v244_v32 = vadd.f32 %v243_v30, %v242_v29 }
  0x96   :  { %240 = vadd.xlane.f32.xlu0 %v239_v31  ;;  %245 = vadd.xlane.f32.xlu1 %v244_v32 }
 0x11f   :  { %v225_v34 = vpop.xlane.xlu0 %224  ;;  %v220_v35 = vpop.xlane.xlu1 %219 }
 0x120   :  { %v227_v36 = vsel %vm215_vm0, %v225_v34, 0.0  ;;  %v226_v38 = vsel %vm215_vm0, %v220_v35, 0.0 }
 0x121   :  { %v228_v39 = vadd.f32 %v227_v36, %v226_v38 }
 0x123   :  { %v229_v40 = vadd.f32 %v228_v39, %v214_v37  ;;  %v241_v41 = vpop.xlane.xlu0 %240  ;;  %v246_v42 = vpop.xlane.xlu1 %245 }
 0x124   :  { %v247_v43 = vsel %vm215_vm0, %v241_v41, 0.0  ;;  %v248_v45 = vsel %vm215_vm0, %v246_v42, 0.0 }
 0x125   :  { %231 = vst.msk [vmem:[%s340_s2] sm:$0xf] %vm17_vm1, %v229_v40  ;;  %v249_v46 = vadd.f32 %v248_v45, %v247_v43 }
 0x127   :  { %v250_v47 = vadd.f32 %v249_v46, %v232_v44 }
 0x129   :  { %251 = vst.msk [vmem:[%s341_s3] sm:$0xf] %vm17_vm1, %v250_v47 }

// kernel: basic_block_forward.4
= control target key start
LH: loop header
LB: loop body
LE: loop exit
PB: predicated region body
PF: predicated region fallthrough
CT: control target
= control target key end

     0   :  { %v404_v0 = vmov 2   ;;  %v405_v1 = vmov 0   ;;  %v406_v3 = vmov 3   ;;  %v407_v4 = vmov 1   ;;  %s536_s1 = inlined_call_operand.vmem [shape: f32[4,4], index: 1, kind: input, shape index: {}]   ;;  %s537_s2 = inlined_call_operand.vmem [shape: f32[4,1], index: 2, kind: input, shape index: {}]   ;;  %s538_s3 = inlined_call_operand.vmem [shape: f32[4,4], index: 3, kind: input, shape index: {}]   ;;  %s539_s0 = inlined_call_operand.vmem [shape: f32[2,4,256], index: 0, kind: input, shape index: {}]   ;;  %s540_s4 = inlined_call_operand.vmem [shape: f32[1,4,1], index: 4, kind: output, shape index: {0}]   ;;  %s541_s5 = inlined_call_operand.vmem [shape: f32[1,4,1], index: 5, kind: output, shape index: {1}]  }
   0x1   :  { %397 = vset.pattern.permute.xlu1 %v404_v0  ;;  %395 = vset.pattern.permute.xlu0 %v405_v1  ;;  %v26_v2 = vld [vmem:[%s536_s1] sm:$0xf]  ;;  %v36_v7 = vlaneseq  ;;  %v28_v12 = vld [vmem:[%s539_s0 + $0x8] sm:$0xff]  ;;  %vm345_vm0 = vcmask 1043456   ;;  %vm23_vm1 = vcmask 3072  }
   0x2   :  { %125 = vperm.xlu1 %397, %v26_v2   ;;  %31 = vperm.xlu0 %395, %v26_v2   ;;  %v220_v5 = vld [vmem:[%s537_s2] sm:$0xf] }
   0x3   :  { %v234_v6 = vld [vmem:[%s538_s3] sm:$0xf]  ;;  %v37_v8 = vshrl.u32 %v36_v7, 7 }
   0x4   :  { %v27_v11 = vld [vmem:[%s539_s0] sm:$0xff] }
   0x5   :  { %v448_v9 = vsub.s32 0, %v37_v8  ;;  %v42_v10 = vsub.s32 4, %v37_v8  ;;  %v456_v13 = vsub.s32 1, %v37_v8  ;;  %v86_v14 = vsub.s32 5, %v37_v8 }
   0x6   :  { %398 = vset.pattern.permute.xlu1 %v406_v3  ;;  %396 = vset.pattern.permute.xlu0 %v407_v4  ;;  %v458_v15 = vsub.s32 2, %v37_v8  ;;  %v134_v16 = vsub.s32 6, %v37_v8  ;;  %v460_v17 = vsub.s32 3, %v37_v8  ;;  %v182_v18 = vsub.s32 7, %v37_v8 }
   0x7   :  { %173 = vperm.xlu1 %398, %v26_v2   ;;  %77 = vperm.xlu0 %396, %v26_v2   ;;  %v39_v19 = vrot.slane %v27_v11, %v448_v9  ;;  %v43_v20 = vrot.slane %v27_v11, %v42_v10  ;;  %v47_v21 = vrot.slane %v28_v12, %v448_v9 }
   0x8   :  { %v51_v22 = vrot.slane %v28_v12, %v42_v10  ;;  %v83_v23 = vrot.slane %v27_v11, %v456_v13  ;;  %v87_v24 = vrot.slane %v27_v11, %v86_v14  ;;  %v91_v25 = vrot.slane %v28_v12, %v456_v13 }
   0x9   :  { %v95_v26 = vrot.slane %v28_v12, %v86_v14  ;;  %v131_v27 = vrot.slane %v27_v11, %v458_v15  ;;  %v135_v28 = vrot.slane %v27_v11, %v134_v16  ;;  %v139_v29 = vrot.slane %v28_v12, %v458_v15 }
   0xa   :  { %v143_v30 = vrot.slane %v28_v12, %v134_v16  ;;  %v179_v33 = vrot.slane %v27_v11, %v460_v17  ;;  %v183_v34 = vrot.slane %v27_v11, %v182_v18  ;;  %v187_v35 = vrot.slane %v28_v12, %v460_v17 }
   0xb   :  { %399 = vset.pattern.permute.xlu1 %v405_v1  ;;  %400 = vset.pattern.permute.xlu0 %v405_v1  ;;  %v191_v36 = vrot.slane %v28_v12, %v182_v18  ;;  %v59_v37 = vrot.slane %v39_v19, %v448_v9  ;;  %v63_v38 = vrot.slane %v43_v20, %v448_v9 }
   0xc   :  { %223 = vperm.xlu1 %399, %v220_v5   ;;  %237 = vperm.xlu0 %400, %v234_v6   ;;  %v67_v39 = vrot.slane %v47_v21, %v448_v9  ;;  %v71_v40 = vrot.slane %v51_v22, %v448_v9  ;;  %v103_v41 = vrot.slane %v83_v23, %v456_v13 }
   0xd   :  { %v107_v42 = vrot.slane %v87_v24, %v456_v13  ;;  %v111_v43 = vrot.slane %v91_v25, %v456_v13  ;;  %v115_v44 = vrot.slane %v95_v26, %v456_v13  ;;  %v151_v45 = vrot.slane %v131_v27, %v458_v15 }
   0xe   :  { %v155_v46 = vrot.slane %v135_v28, %v458_v15  ;;  %v159_v47 = vrot.slane %v139_v29, %v458_v15  ;;  %v163_v48 = vrot.slane %v143_v30, %v458_v15  ;;  %v199_v49 = vrot.slane %v179_v33, %v460_v17 }
   0xf   :  { %v203_v50 = vrot.slane %v183_v34, %v460_v17  ;;  %v207_v51 = vrot.slane %v187_v35, %v460_v17  ;;  %v211_v52 = vrot.slane %v191_v36, %v460_v17 }
  0x10   :  { %401 = vset.pattern.permute.xlu1 %v407_v4  ;;  %403 = vset.pattern.permute.xlu0 %v406_v3 }
  0x11   :  { %261 = vperm.xlu1 %401, %v234_v6   ;;  %317 = vperm.xlu0 %403, %v234_v6  }
  0x15   :  { %402 = vset.pattern.permute.xlu1 %v404_v0 }
  0x16   :  { %289 = vperm.xlu1 %402, %v234_v6  }
  0x81   :  { %v32_v31 = vpop.permute.xlu0 %31  ;;  %v126_v32 = vpop.permute.xlu1 %125 }
  0x82   :  { %v72_v53 = vmul.f32 %v59_v37, %v32_v31  ;;  %v73_v54 = vmul.f32 %v63_v38, %v32_v31  ;;  %v74_v55 = vmul.f32 %v67_v39, %v32_v31  ;;  %v75_v56 = vmul.f32 %v71_v40, %v32_v31 }
  0x83   :  { %v164_v63 = vmul.f32 %v151_v45, %v126_v32  ;;  %v165_v0 = vmul.f32 %v155_v46, %v126_v32  ;;  %v166_v1 = vmul.f32 %v159_v47, %v126_v32  ;;  %v167_v2 = vmul.f32 %v163_v48, %v126_v32 }
  0x86   :  { %v78_v57 = vpop.permute.xlu0 %77  ;;  %v174_v62 = vpop.permute.xlu1 %173 }
  0x87   :  { %v116_v58 = vmul.f32 %v103_v41, %v78_v57  ;;  %v117_v59 = vmul.f32 %v107_v42, %v78_v57  ;;  %v118_v60 = vmul.f32 %v111_v43, %v78_v57  ;;  %v119_v61 = vmul.f32 %v115_v44, %v78_v57 }
  0x88   :  { %v212_v7 = vmul.f32 %v199_v49, %v174_v62  ;;  %v213_v8 = vmul.f32 %v203_v50, %v174_v62  ;;  %v214_v10 = vmul.f32 %v207_v51, %v174_v62  ;;  %v215_v11 = vmul.f32 %v211_v52, %v174_v62 }
  0x89   :  { %v120_v3 = vadd.f32 %v116_v58, %v72_v53  ;;  %v121_v4 = vadd.f32 %v117_v59, %v73_v54  ;;  %v122_v5 = vadd.f32 %v118_v60, %v74_v55  ;;  %v123_v6 = vadd.f32 %v119_v61, %v75_v56 }
  0x8b   :  { %v168_v12 = vadd.f32 %v164_v63, %v120_v3  ;;  %v169_v14 = vadd.f32 %v165_v0, %v121_v4  ;;  %v170_v16 = vadd.f32 %v166_v1, %v122_v5  ;;  %v171_v18 = vadd.f32 %v167_v2, %v123_v6  ;;  %v224_v19 = vpop.permute.xlu1 %223  ;;  %v238_v37 = vpop.permute.xlu0 %237 }
  0x8d   :  { %v216_v20 = vadd.f32 %v212_v7, %v168_v12  ;;  %v217_v21 = vadd.f32 %v213_v8, %v169_v14  ;;  %v218_v22 = vadd.f32 %v214_v10, %v170_v16  ;;  %v219_v23 = vadd.f32 %v215_v11, %v171_v18 }
  0x8f   :  { %v226_v24 = vadd.f32 %v224_v19, %v216_v20  ;;  %v227_v25 = vadd.f32 %v224_v19, %v217_v21  ;;  %v228_v26 = vadd.f32 %v224_v19, %v218_v22  ;;  %v229_v27 = vadd.f32 %v224_v19, %v219_v23 }
  0x90   :  { %v262_v36 = vpop.permute.xlu1 %261  ;;  %v318_v57 = vpop.permute.xlu0 %317 }
  0x91   :  { %v230_v28 = vmax.f32 %v226_v24, 0.0  ;;  %v231_v29 = vmax.f32 %v227_v25, 0.0  ;;  %v232_v30 = vmax.f32 %v228_v26, 0.0  ;;  %v233_v31 = vmax.f32 %v229_v27, 0.0 }
  0x93   :  { %v243_v32 = vrot.slane %v230_v28, %v448_v9  ;;  %v247_v33 = vrot.slane %v231_v29, %v448_v9  ;;  %v251_v34 = vrot.slane %v232_v30, %v448_v9  ;;  %v255_v35 = vrot.slane %v233_v31, %v448_v9 }
  0x94   :  { %v267_v38 = vrot.slane %v230_v28, %v456_v13  ;;  %v271_v39 = vrot.slane %v231_v29, %v456_v13  ;;  %v275_v40 = vrot.slane %v232_v30, %v456_v13  ;;  %v279_v41 = vrot.slane %v233_v31, %v456_v13 }
  0x95   :  { %v256_v42 = vmul.f32 %v243_v32, %v238_v37  ;;  %v257_v43 = vmul.f32 %v247_v33, %v238_v37  ;;  %v258_v44 = vmul.f32 %v251_v34, %v238_v37  ;;  %v259_v45 = vmul.f32 %v255_v35, %v238_v37  ;;  %v290_v56 = vpop.permute.xlu1 %289 }
  0x96   :  { %v280_v46 = vmul.f32 %v267_v38, %v262_v36  ;;  %v281_v47 = vmul.f32 %v271_v39, %v262_v36  ;;  %v282_v48 = vmul.f32 %v275_v40, %v262_v36  ;;  %v283_v49 = vmul.f32 %v279_v41, %v262_v36 }
  0x97   :  { %v323_v9 = vrot.slane %v230_v28, %v460_v17  ;;  %v327_v50 = vrot.slane %v231_v29, %v460_v17  ;;  %v331_v51 = vrot.slane %v232_v30, %v460_v17  ;;  %v335_v52 = vrot.slane %v233_v31, %v460_v17 }
  0x98   :  { %v284_v53 = vadd.f32 %v280_v46, %v256_v42  ;;  %v285_v54 = vadd.f32 %v281_v47, %v257_v43  ;;  %v286_v55 = vadd.f32 %v282_v48, %v258_v44  ;;  %v287_v13 = vadd.f32 %v283_v49, %v259_v45 }
  0x99   :  { %v295_v58 = vrot.slane %v230_v28, %v458_v15  ;;  %v299_v59 = vrot.slane %v231_v29, %v458_v15  ;;  %v303_v60 = vrot.slane %v232_v30, %v458_v15  ;;  %v307_v61 = vrot.slane %v233_v31, %v458_v15 }
  0x9a   :  { %v336_v2 = vmul.f32 %v323_v9, %v318_v57  ;;  %v337_v17 = vmul.f32 %v327_v50, %v318_v57  ;;  %v338_v3 = vmul.f32 %v331_v51, %v318_v57  ;;  %v339_v4 = vmul.f32 %v335_v52, %v318_v57 }
  0x9b   :  { %v308_v62 = vmul.f32 %v295_v58, %v290_v56  ;;  %v309_v63 = vmul.f32 %v299_v59, %v290_v56  ;;  %v310_v0 = vmul.f32 %v303_v60, %v290_v56  ;;  %v311_v1 = vmul.f32 %v307_v61, %v290_v56 }
  0x9c   :  { %v408_v32 = vmov 0.0  }
  0x9d   :  { %v314_v5 = vadd.f32 %v310_v0, %v286_v55  ;;  %v315_v6 = vadd.f32 %v311_v1, %v287_v13  ;;  %v312_v7 = vadd.f32 %v308_v62, %v284_v53  ;;  %v313_v8 = vadd.f32 %v309_v63, %v285_v54  ;;  %24 = vst.msk [vmem:[%s540_s4] sm:$0xf] %vm23_vm1, %v408_v32 }
  0x9e   :  { %25 = vst.msk [vmem:[%s541_s5] sm:$0xf] %vm23_vm1, %v408_v32 }
  0x9f   :  { %v342_v10 = vadd.f32 %v338_v3, %v314_v5  ;;  %v343_v11 = vadd.f32 %v339_v4, %v315_v6  ;;  %v340_v12 = vadd.f32 %v336_v2, %v312_v7  ;;  %v341_v14 = vadd.f32 %v337_v17, %v313_v8 }
  0xa1   :  { %v351_v16 = vsel %vm345_vm0, %v342_v10, 0.0  ;;  %v352_v15 = vsel %vm345_vm0, %v343_v11, 0.0  ;;  %v346_v18 = vsel %vm345_vm0, %v340_v12, 0.0  ;;  %v347_v19 = vsel %vm345_vm0, %v341_v14, 0.0 }
  0xa2   :  { %v353_v20 = vadd.f32 %v352_v15, %v351_v16  ;;  %v348_v21 = vadd.f32 %v347_v19, %v346_v18  ;;  %v365_v22 = vmul.f32 %v342_v10, %v342_v10  ;;  %v366_v23 = vmul.f32 %v343_v11, %v343_v11 }
  0xa3   :  { %v363_v24 = vmul.f32 %v340_v12, %v340_v12  ;;  %v364_v25 = vmul.f32 %v341_v14, %v341_v14 }
  0xa4   :  { %354 = vadd.xlane.f32.xlu0 %v353_v20  ;;  %349 = vadd.xlane.f32.xlu1 %v348_v21  ;;  %v372_v26 = vsel %vm345_vm0, %v365_v22, 0.0  ;;  %v373_v27 = vsel %vm345_vm0, %v366_v23, 0.0  ;;  %v344_v36 = vld [vmem:[%s540_s4] sm:$0xf] }
  0xa5   :  { %v367_v28 = vsel %vm345_vm0, %v363_v24, 0.0  ;;  %v368_v29 = vsel %vm345_vm0, %v364_v25, 0.0  ;;  %v374_v30 = vadd.f32 %v373_v27, %v372_v26  ;;  %v362_v43 = vld [vmem:[%s541_s5] sm:$0xf] }
  0xa6   :  { %v369_v31 = vadd.f32 %v368_v29, %v367_v28 }
  0xa8   :  { %375 = vadd.xlane.f32.xlu0 %v374_v30  ;;  %370 = vadd.xlane.f32.xlu1 %v369_v31 }
 0x131   :  { %v355_v33 = vpop.xlane.xlu0 %354  ;;  %v350_v34 = vpop.xlane.xlu1 %349 }
 0x132   :  { %v357_v35 = vsel %vm345_vm0, %v355_v33, 0.0  ;;  %v356_v37 = vsel %vm345_vm0, %v350_v34, 0.0 }
 0x133   :  { %v358_v38 = vadd.f32 %v357_v35, %v356_v37 }
 0x135   :  { %v359_v39 = vadd.f32 %v358_v38, %v344_v36  ;;  %v376_v40 = vpop.xlane.xlu0 %375  ;;  %v371_v41 = vpop.xlane.xlu1 %370 }
 0x136   :  { %v378_v42 = vsel %vm345_vm0, %v376_v40, 0.0  ;;  %v377_v44 = vsel %vm345_vm0, %v371_v41, 0.0 }
 0x137   :  { %361 = vst.msk [vmem:[%s540_s4] sm:$0xf] %vm23_vm1, %v359_v39  ;;  %v379_v45 = vadd.f32 %v378_v42, %v377_v44 }
 0x139   :  { %v380_v46 = vadd.f32 %v379_v45, %v362_v43 }
 0x13b   :  { %381 = vst.msk [vmem:[%s541_s5] sm:$0xf] %vm23_vm1, %v380_v46 }

// kernel: basic_block_forward.5
= control target key start
LH: loop header
LB: loop body
LE: loop exit
PB: predicated region body
PF: predicated region fallthrough
CT: control target
= control target key end

     0   :  { %v420_v0 = vmov 2   ;;  %v421_v1 = vmov 0   ;;  %v422_v3 = vmov 3   ;;  %v423_v4 = vmov 1   ;;  %s563_s2 = inlined_call_operand.vmem [shape: f32[4,4], index: 2, kind: input, shape index: {}]   ;;  %s564_s3 = inlined_call_operand.vmem [shape: f32[4,1], index: 3, kind: input, shape index: {}]   ;;  %s565_s4 = inlined_call_operand.vmem [shape: f32[4,4], index: 4, kind: input, shape index: {}]   ;;  %s566_s1 = inlined_call_operand.vmem [shape: f32[2,1,1], index: 1, kind: input, shape index: {}]   ;;  %s567_s5 = inlined_call_operand.vmem [shape: f32[4,1], index: 5, kind: input, shape index: {}]   ;;  %s568_s0 = inlined_call_operand.vmem [shape: f32[2,4,256], index: 0, kind: input, shape index: {}]   ;;  %s569_s6 = inlined_call_operand.vmem [shape: f32[2,4,256], index: 6, kind: output, shape index: {}]  }
   0x1   :  { %409 = vset.pattern.permute.xlu1 %v420_v0  ;;  %407 = vset.pattern.permute.xlu0 %v421_v1  ;;  %v25_v2 = vld [vmem:[%s563_s2] sm:$0xf]  ;;  %v33_v10 = vlaneseq  ;;  %v487_v15 = vld [vmem:[%s568_s0 + $0x8] sm:$0xff] }
   0x2   :  { %122 = vperm.xlu1 %409, %v25_v2   ;;  %28 = vperm.xlu0 %407, %v25_v2   ;;  %v217_v5 = vld [vmem:[%s564_s3] sm:$0xf] }
   0x3   :  { %v231_v6 = vld [vmem:[%s565_s4] sm:$0xf]  ;;  %v34_v11 = vshrl.u32 %v33_v10, 7 }
   0x4   :  { %v402_v7 = vld [vmem:[%s566_s1 + $0x1] ss:$0 sm:$0xff]  ;;  %v401_v9 = vld [vmem:[%s566_s1] ss:$0 sm:$0xff] }
   0x5   :  { %v341_v8 = vld [vmem:[%s567_s5] sm:$0xf]  ;;  %v477_v12 = vsub.s32 0, %v34_v11  ;;  %v39_v13 = vsub.s32 4, %v34_v11  ;;  %v489_v16 = vsub.s32 1, %v34_v11  ;;  %v83_v17 = vsub.s32 5, %v34_v11 }
   0x6   :  { %410 = vset.pattern.permute.xlu1 %v422_v3  ;;  %408 = vset.pattern.permute.xlu0 %v423_v4  ;;  %v482_v14 = vld [vmem:[%s568_s0] sm:$0xff]  ;;  %v491_v18 = vsub.s32 2, %v34_v11  ;;  %v131_v19 = vsub.s32 6, %v34_v11  ;;  %v493_v20 = vsub.s32 3, %v34_v11  ;;  %v179_v21 = vsub.s32 7, %v34_v11 }
   0x7   :  { %170 = vperm.xlu1 %410, %v25_v2   ;;  %74 = vperm.xlu0 %408, %v25_v2   ;;  %v36_v22 = vrot.slane %v482_v14, %v477_v12  ;;  %v40_v23 = vrot.slane %v482_v14, %v39_v13  ;;  %v44_v24 = vrot.slane %v487_v15, %v477_v12 }
   0x8   :  { %v48_v25 = vrot.slane %v487_v15, %v39_v13  ;;  %v80_v26 = vrot.slane %v482_v14, %v489_v16  ;;  %v84_v27 = vrot.slane %v482_v14, %v83_v17  ;;  %v88_v28 = vrot.slane %v487_v15, %v489_v16 }
   0x9   :  { %v92_v29 = vrot.slane %v487_v15, %v83_v17  ;;  %v128_v31 = vrot.slane %v482_v14, %v491_v18  ;;  %v132_v32 = vrot.slane %v482_v14, %v131_v19  ;;  %v136_v33 = vrot.slane %v487_v15, %v491_v18 }
   0xa   :  { %v140_v34 = vrot.slane %v487_v15, %v131_v19  ;;  %v176_v36 = vrot.slane %v482_v14, %v493_v20  ;;  %v180_v37 = vrot.slane %v482_v14, %v179_v21  ;;  %v184_v38 = vrot.slane %v487_v15, %v493_v20 }
   0xb   :  { %411 = vset.pattern.permute.xlu1 %v421_v1  ;;  %412 = vset.pattern.permute.xlu0 %v421_v1  ;;  %v188_v39 = vrot.slane %v487_v15, %v179_v21  ;;  %v56_v40 = vrot.slane %v36_v22, %v477_v12  ;;  %v60_v41 = vrot.slane %v40_v23, %v477_v12 }
   0xc   :  { %220 = vperm.xlu1 %411, %v217_v5   ;;  %234 = vperm.xlu0 %412, %v231_v6   ;;  %v64_v42 = vrot.slane %v44_v24, %v477_v12  ;;  %v68_v43 = vrot.slane %v48_v25, %v477_v12  ;;  %v100_v44 = vrot.slane %v80_v26, %v489_v16 }
   0xd   :  { %v104_v45 = vrot.slane %v84_v27, %v489_v16  ;;  %v108_v46 = vrot.slane %v88_v28, %v489_v16  ;;  %v112_v47 = vrot.slane %v92_v29, %v489_v16  ;;  %v148_v48 = vrot.slane %v128_v31, %v491_v18 }
   0xe   :  { %v152_v49 = vrot.slane %v132_v32, %v491_v18  ;;  %v156_v50 = vrot.slane %v136_v33, %v491_v18  ;;  %v160_v51 = vrot.slane %v140_v34, %v491_v18  ;;  %v196_v53 = vrot.slane %v176_v36, %v493_v20 }
   0xf   :  { %v200_v54 = vrot.slane %v180_v37, %v493_v20  ;;  %v204_v55 = vrot.slane %v184_v38, %v493_v20  ;;  %v208_v56 = vrot.slane %v188_v39, %v493_v20 }
  0x10   :  { %413 = vset.pattern.permute.xlu1 %v423_v4  ;;  %415 = vset.pattern.permute.xlu0 %v422_v3 }
  0x11   :  { %258 = vperm.xlu1 %413, %v231_v6   ;;  %314 = vperm.xlu0 %415, %v231_v6  }
  0x15   :  { %414 = vset.pattern.permute.xlu1 %v420_v0  ;;  %417 = vset.pattern.permute.xlu0 %v421_v1 }
  0x16   :  { %286 = vperm.xlu1 %414, %v231_v6   ;;  %368 = vperm.xlu0 %417, %v402_v7  }
  0x1a   :  { %416 = vset.pattern.permute.xlu1 %v421_v1 }
  0x1b   :  { %344 = vperm.xlu1 %416, %v341_v8  }
  0x1f   :  { %364 = vperm.xlu1 %416, %v401_v9  }
  0x81   :  { %v123_v30 = vpop.permute.xlu1 %122  ;;  %v29_v35 = vpop.permute.xlu0 %28 }
  0x82   :  { %v69_v58 = vmul.f32 %v56_v40, %v29_v35  ;;  %v70_v59 = vmul.f32 %v60_v41, %v29_v35  ;;  %v71_v60 = vmul.f32 %v64_v42, %v29_v35  ;;  %v72_v61 = vmul.f32 %v68_v43, %v29_v35 }
  0x83   :  { %v161_v2 = vmul.f32 %v148_v48, %v123_v30  ;;  %v162_v3 = vmul.f32 %v152_v49, %v123_v30  ;;  %v163_v4 = vmul.f32 %v156_v50, %v123_v30  ;;  %v164_v5 = vmul.f32 %v160_v51, %v123_v30 }
  0x86   :  { %v171_v52 = vpop.permute.xlu1 %170  ;;  %v75_v57 = vpop.permute.xlu0 %74 }
  0x87   :  { %v113_v62 = vmul.f32 %v100_v44, %v75_v57  ;;  %v114_v63 = vmul.f32 %v104_v45, %v75_v57  ;;  %v115_v0 = vmul.f32 %v108_v46, %v75_v57  ;;  %v116_v1 = vmul.f32 %v112_v47, %v75_v57 }
  0x88   :  { %v209_v10 = vmul.f32 %v196_v53, %v171_v52  ;;  %v210_v11 = vmul.f32 %v200_v54, %v171_v52  ;;  %v211_v13 = vmul.f32 %v204_v55, %v171_v52  ;;  %v212_v17 = vmul.f32 %v208_v56, %v171_v52 }
  0x89   :  { %v117_v6 = vadd.f32 %v113_v62, %v69_v58  ;;  %v118_v7 = vadd.f32 %v114_v63, %v70_v59  ;;  %v119_v8 = vadd.f32 %v115_v0, %v71_v60  ;;  %v120_v9 = vadd.f32 %v116_v1, %v72_v61 }
  0x8b   :  { %v221_v19 = vpop.permute.xlu1 %220  ;;  %v165_v21 = vadd.f32 %v161_v2, %v117_v6  ;;  %v166_v22 = vadd.f32 %v162_v3, %v118_v7  ;;  %v167_v23 = vadd.f32 %v163_v4, %v119_v8  ;;  %v168_v24 = vadd.f32 %v164_v5, %v120_v9  ;;  %v235_v42 = vpop.permute.xlu0 %234 }
  0x8d   :  { %v213_v25 = vadd.f32 %v209_v10, %v165_v21  ;;  %v214_v26 = vadd.f32 %v210_v11, %v166_v22  ;;  %v215_v27 = vadd.f32 %v211_v13, %v167_v23  ;;  %v216_v28 = vadd.f32 %v212_v17, %v168_v24 }
  0x8f   :  { %v223_v29 = vadd.f32 %v221_v19, %v213_v25  ;;  %v224_v31 = vadd.f32 %v221_v19, %v214_v26  ;;  %v225_v30 = vadd.f32 %v221_v19, %v215_v27  ;;  %v226_v32 = vadd.f32 %v221_v19, %v216_v28 }
  0x90   :  { %v259_v33 = vpop.permute.xlu1 %258  ;;  %v315_v62 = vpop.permute.xlu0 %314  ;;  %v375_v27 = vcombine.high %v482_v14, %v482_v14 }
  0x91   :  { %v227_v34 = vmax.f32 %v223_v29, 0.0  ;;  %v228_v35 = vmax.f32 %v224_v31, 0.0  ;;  %v229_v36 = vmax.f32 %v225_v30, 0.0  ;;  %v230_v37 = vmax.f32 %v226_v32, 0.0 }
  0x93   :  { %v264_v38 = vrot.slane %v227_v34, %v489_v16  ;;  %v268_v39 = vrot.slane %v228_v35, %v489_v16  ;;  %v272_v40 = vrot.slane %v229_v36, %v489_v16  ;;  %v276_v41 = vrot.slane %v230_v37, %v489_v16 }
  0x94   :  { %v240_v43 = vrot.slane %v227_v34, %v477_v12  ;;  %v244_v44 = vrot.slane %v228_v35, %v477_v12  ;;  %v248_v45 = vrot.slane %v229_v36, %v477_v12  ;;  %v252_v46 = vrot.slane %v230_v37, %v477_v12 }
  0x95   :  { %v277_v47 = vmul.f32 %v264_v38, %v259_v33  ;;  %v278_v48 = vmul.f32 %v268_v39, %v259_v33  ;;  %v279_v49 = vmul.f32 %v272_v40, %v259_v33  ;;  %v280_v50 = vmul.f32 %v276_v41, %v259_v33  ;;  %v287_v51 = vpop.permute.xlu1 %286  ;;  %v369_v25 = vpop.permute.xlu0 %368 }
  0x96   :  { %v253_v52 = vmul.f32 %v240_v43, %v235_v42  ;;  %v254_v53 = vmul.f32 %v244_v44, %v235_v42  ;;  %v255_v54 = vmul.f32 %v248_v45, %v235_v42  ;;  %v256_v55 = vmul.f32 %v252_v46, %v235_v42 }
  0x97   :  { %v320_v16 = vrot.slane %v227_v34, %v493_v20  ;;  %v324_v56 = vrot.slane %v228_v35, %v493_v20  ;;  %v328_v57 = vrot.slane %v229_v36, %v493_v20  ;;  %v332_v58 = vrot.slane %v230_v37, %v493_v20 }
  0x98   :  { %v281_v59 = vadd.f32 %v277_v47, %v253_v52  ;;  %v282_v60 = vadd.f32 %v278_v48, %v254_v53  ;;  %v283_v12 = vadd.f32 %v279_v49, %v255_v54  ;;  %v284_v61 = vadd.f32 %v280_v50, %v256_v55 }
  0x99   :  { %v292_v63 = vrot.slane %v227_v34, %v491_v18  ;;  %v296_v0 = vrot.slane %v228_v35, %v491_v18  ;;  %v300_v1 = vrot.slane %v229_v36, %v491_v18  ;;  %v304_v2 = vrot.slane %v230_v37, %v491_v18 }
  0x9a   :  { %v345_v3 = vpop.permute.xlu1 %344  ;;  %v333_v8 = vmul.f32 %v320_v16, %v315_v62  ;;  %v334_v20 = vmul.f32 %v324_v56, %v315_v62  ;;  %v335_v9 = vmul.f32 %v328_v57, %v315_v62  ;;  %v336_v10 = vmul.f32 %v332_v58, %v315_v62 }
  0x9b   :  { %v305_v4 = vmul.f32 %v292_v63, %v287_v51  ;;  %v306_v5 = vmul.f32 %v296_v0, %v287_v51  ;;  %v307_v6 = vmul.f32 %v300_v1, %v287_v51  ;;  %v308_v7 = vmul.f32 %v304_v2, %v287_v51 }
  0x9c   :  { %v376_v18 = vcombine.high %v487_v15, %v487_v15 }
  0x9d   :  { %v311_v11 = vadd.f32 %v307_v6, %v283_v12  ;;  %v312_v13 = vadd.f32 %v308_v7, %v284_v61  ;;  %v309_v17 = vadd.f32 %v305_v4, %v281_v59  ;;  %v310_v19 = vadd.f32 %v306_v5, %v282_v60 }
  0x9e   :  { %v365_v26 = vpop.permute.xlu1 %364 }
  0x9f   :  { %v339_v21 = vadd.f32 %v335_v9, %v311_v11  ;;  %v340_v22 = vadd.f32 %v336_v10, %v312_v13  ;;  %v337_v23 = vadd.f32 %v333_v8, %v309_v17  ;;  %v338_v24 = vadd.f32 %v334_v20, %v310_v19 }
  0xa1   :  { %v349_v28 = vadd.f32 %v345_v3, %v339_v21  ;;  %v350_v29 = vadd.f32 %v345_v3, %v340_v22  ;;  %v347_v31 = vadd.f32 %v345_v3, %v337_v23  ;;  %v348_v30 = vadd.f32 %v345_v3, %v338_v24 }
  0xa3   :  { %v373_v32 = vmul.f32 %v369_v25, %v349_v28  ;;  %v374_v33 = vmul.f32 %v369_v25, %v350_v29  ;;  %v371_v34 = vmul.f32 %v365_v26, %v347_v31  ;;  %v372_v35 = vmul.f32 %v365_v26, %v348_v30 }
  0xa5   :  { %v381_v36 = vadd.f32 %v373_v32, %v487_v15  ;;  %v382_v37 = vadd.f32 %v376_v18, %v374_v33  ;;  %v379_v38 = vadd.f32 %v371_v34, %v482_v14  ;;  %v380_v39 = vadd.f32 %v375_v27, %v372_v35 }
  0xa7   :  { %v385_v40 = vmax.f32 %v381_v36, 0.0  ;;  %v386_v41 = vmax.f32 %v382_v37, 0.0  ;;  %v383_v42 = vmax.f32 %v379_v38, 0.0  ;;  %v384_v43 = vmax.f32 %v380_v39, 0.0 }
  0xa9   :  { %v392_v44 = vcombine.low %v385_v40, %v386_v41  ;;  %v391_v45 = vcombine.low %v383_v42, %v384_v43 }
  0xab   :  { %396 = vst [vmem:[%s569_s6 + $0x8] sm:$0xff] %v392_v44  ;;  %395 = vst [vmem:[%s569_s6] sm:$0xff] %v391_v45 }

</bundles_post_ra>
